<compile_context>
chip_gen: v7x
topology: tpu7x:2x2x1
jax: 0.10.0
libtpu: 0.0.40
codegen_flags: <defaults>
</compile_context>

<pallas_src>
import functools

import jax
import jax.numpy as jnp
from jax.experimental import pallas as pl
from jax.experimental.pallas import tpu as pltpu

BN_EPS = 1e-5  # nn.BatchNorm2d default eps


def _pcb_head_kernel(feat_ref, cw_ref, bias_ref, fw_ref, fb_ref,
                     feat_out_ref, logits_out_ref, *, pool_chunk):
    """One (stripe, batch-tile) grid step.

    feat_ref       : [BT, P, C]  bf16  stripe pixels (P on sublanes, C on lanes)
    cw_ref         : [C, L]      bf16  conv1x1 weight, BN scale and 1/P folded in
    bias_ref       : [1, L]      f32   folded conv-bias + BN shift
    fw_ref         : [L, Kp]     bf16  fc weight (transposed, class dim lane-padded)
    fb_ref         : [1, Kp]     f32   fc bias (lane-padded)
    feat_out_ref   : [BT, L]     f32   local_feat
    logits_out_ref : [BT, Kp]    f32   logits
    """
    P = feat_ref.shape[1]

    # avg_pool2d over (stripe_h, W): chunked f32-accumulated sublane reduction.
    # The 1/P divisor is folded into cw.  Chunking (static slices on the Ref) bounds
    # any bf16->f32 upcast temp to pool_chunk rows instead of the whole block.
    pooled = jnp.sum(feat_ref[:, 0:pool_chunk, :], axis=1, dtype=jnp.float32)
    for i in range(pool_chunk, P, pool_chunk):
        pooled = pooled + jnp.sum(feat_ref[:, i:i + pool_chunk, :], axis=1,
                                  dtype=jnp.float32)                       # [BT, C] f32

    # 1x1 conv over [N, C, 1, 1] == channel matmul; bf16 MXU, f32 accumulation.
    # Conv bias + BatchNorm (inference) are folded into a single bias add.
    y = jnp.dot(pooled.astype(cw_ref.dtype), cw_ref[...],
                preferred_element_type=jnp.float32)                        # [BT, L]
    y = jnp.maximum(y + bias_ref[...], 0.0)                                # ReLU
    feat_out_ref[...] = y.astype(feat_out_ref.dtype)                       # local_feat

    # Linear head (weight pre-transposed to [L, Kp], Kp multiple of 128).
    logits = jnp.dot(y.astype(fw_ref.dtype), fw_ref[...],
                     preferred_element_type=jnp.float32) + fb_ref[...]     # [BT, Kp]
    logits_out_ref[...] = logits.astype(logits_out_ref.dtype)


def _fold_bn(params, inv_pool):
    """Fold conv bias + BatchNorm2d (inference running stats) + the 1/P pool divisor
    into a single per-stripe weight/bias pair (algebraically exact)."""
    inv_std = jax.lax.rsqrt(params["bn_var"] + BN_EPS)                     # [S, 1, L]
    scale = params["bn_gamma"] * inv_std                                   # [S, 1, L]
    conv_w = params["conv_w"] * scale * inv_pool                           # [S, C, L]
    bias = (params["conv_b"] - params["bn_mean"]) * scale + params["bn_beta"]
    return conv_w, bias


def _vmem_capacity_bytes():
    try:
        return int(pltpu.get_tpu_info().vmem_capacity_bytes)
    except Exception:
        return 64 << 20  # conservative fallback: v7x per-TensorCore VMEM


def _pick_batch_tile(N, per_row_bytes, fixed_bytes, vmem_cap):
    """Largest batch tile (multiple of 8 dividing N) whose double-buffered working set
    fits ~70% of VMEM, capped at 128 rows (fills MXU M; keeps the feat block small on
    v7x) and at N//2 so the grid has >=2 batch tiles (prologue hiding, dual-TC split)."""
    if N <= 8:
        return N
    budget = int(0.70 * vmem_cap)
    max_rows = max(8, (budget - fixed_bytes) // max(per_row_bytes, 1))
    cap = min(128, max_rows, N)
    if N >= 16:
        cap = min(cap, max(8, (N // 2 // 8) * 8))
    cap = max(8, (cap // 8) * 8)
    for bt in range(cap, 7, -8):        # clean blocks: no partial tiles / masked stores
        if N % bt == 0:
            return bt
    return N                             # awkward N: single batch tile (always legal)


def pcb_forward(feat_nhwc, params, num_stripes, batch_tile=None):
    """feat_nhwc: [N, H, W, C] backbone output in NHWC (the natural TPU layout,
    equivalent to PyTorch's NCHW feature map).  Should arrive as bf16 from the
    producer — no cast is done here (the feature map is >70% of HBM traffic).
    Returns (local_feat_list, logits_list): lists of num_stripes arrays [N, L] / [N, K].
    """
    N, H, W, C = feat_nhwc.shape
    assert H % num_stripes == 0, "feature-map height must be divisible by num_stripes"
    assert feat_nhwc.dtype in (jnp.bfloat16, jnp.float32), \
        "feed the feature map as bf16 (preferred) or f32; cast at the producer"
    stripe_h = H // num_stripes
    P = stripe_h * W  # stripe pixels (prefer a multiple of 16 for bf16 sublane packing)

    # Zero-copy split of H into (stripes, stripe pixels); C stays minor => no relayout.
    feat_r = feat_nhwc.reshape(N, num_stripes, P, C)

    L = params["conv_w"].shape[-1]
    K = params["fc_w"].shape[-1]
    Kp = ((K + 127) // 128) * 128

    # Fold BN scale + 1/P into the conv weight; store the streamed weights as bf16
    # (halves the second-largest HBM stream and uses the bf16 MXU path).
    conv_w, bias = _fold_bn(params, 1.0 / P)
    conv_w = conv_w.astype(jnp.bfloat16)
    fc_w = params["fc_w"].astype(jnp.bfloat16)
    fc_b = params["fc_b"]                          # tiny; keep f32 for an exact bias add
    if Kp != K:                                    # lane-pad classes => unmasked vst
        fc_w = jnp.pad(fc_w, ((0, 0), (0, 0), (0, Kp - K)))
        fc_b = jnp.pad(fc_b, ((0, 0), (0, 0), (0, Kp - K)))

    # Generation-aware batch tiling + VMEM request sized from the actual working set.
    itemsize = feat_nhwc.dtype.itemsize
    weight_bytes = 2 * (C * L + L * Kp) + 4 * (L + Kp)          # bf16 weights + f32 biases
    fixed_bytes = 2 * weight_bytes + (4 << 20)                  # dbl-buffered weights + slack
    per_row_bytes = 2 * P * C * itemsize + 2 * (L + Kp) * 4     # dbl-buffered feat + outputs
    vmem_cap = _vmem_capacity_bytes()

    if batch_tile is None:
        bt = _pick_batch_tile(N, per_row_bytes, fixed_bytes, vmem_cap)
    else:
        bt = min(batch_tile, N)
    assert bt == N or N % bt == 0, "batch_tile must divide N"
    nt = N // bt
    grid = (num_stripes, nt)

    vmem_limit = int(min(max(fixed_bytes + bt * per_row_bytes, 16 << 20),
                         int(0.9 * vmem_cap)))

    pool_chunk = 16 if P % 16 == 0 else (8 if P % 8 == 0 else P)

    # Squeezed singleton dims: pure layout metadata, no in-kernel slicing of the block.
    in_specs = [
        pl.BlockSpec((bt, pl.Squeezed(), P, C), lambda s, n: (n, s, 0, 0)),  # stripe pixels
        pl.BlockSpec((pl.Squeezed(), C, L), lambda s, n: (s, 0, 0)),         # conv_w (folded)
        pl.BlockSpec((pl.Squeezed(), 1, L), lambda s, n: (s, 0, 0)),         # folded bias
        pl.BlockSpec((pl.Squeezed(), L, Kp), lambda s, n: (s, 0, 0)),        # fc_w
        pl.BlockSpec((pl.Squeezed(), 1, Kp), lambda s, n: (s, 0, 0)),        # fc_b
    ]
    out_specs = (
        pl.BlockSpec((pl.Squeezed(), bt, L), lambda s, n: (s, n, 0)),        # local_feat
        pl.BlockSpec((pl.Squeezed(), bt, Kp), lambda s, n: (s, n, 0)),       # logits
    )
    out_shape = (
        jax.ShapeDtypeStruct((num_stripes, N, L), jnp.float32),
        jax.ShapeDtypeStruct((num_stripes, N, Kp), jnp.float32),
    )

    kernel = functools.partial(_pcb_head_kernel, pool_chunk=pool_chunk)

    local_feat, logits_p = pl.pallas_call(
        kernel,
        grid=grid,
        in_specs=in_specs,
        out_specs=out_specs,
        out_shape=out_shape,
        compiler_params=pltpu.CompilerParams(
            dimension_semantics=("parallel", "parallel"),
            vmem_limit_bytes=vmem_limit),
    )(feat_r, conv_w, bias, fc_w, fc_b)

    logits = logits_p[:, :, :K]  # drop lane padding

    # Mirror the PyTorch return: two lists of per-stripe tensors.
    local_feat_list = [local_feat[s] for s in range(num_stripes)]
    logits_list = [logits[s] for s in range(num_stripes)]
    return local_feat_list, logits_list


def pcb_reference(feat_nhwc, params, num_stripes):
    """Pure-JAX f32 reference (unfolded BN, unpadded K) for the correctness check."""
    N, H, W, C = feat_nhwc.shape
    stripe_h = H // num_stripes
    x = feat_nhwc.astype(jnp.float32)
    feats, logits = [], []
    for s in range(num_stripes):
        pooled = jnp.mean(x[:, s * stripe_h:(s + 1) * stripe_h, :, :], axis=(1, 2))  # [N, C]
        y = pooled @ params["conv_w"][s] + params["conv_b"][s]
        y = ((y - params["bn_mean"][s]) / jnp.sqrt(params["bn_var"][s] + BN_EPS)
             * params["bn_gamma"][s] + params["bn_beta"][s])
        y = jnp.maximum(y, 0.0)
        feats.append(y)
        logits.append(y @ params["fc_w"][s] + params["fc_b"][s])
    return feats, logits


if __name__ == "__main__":
    # Small stand-in shapes (module defaults: C_in=2048, L=256, K=100, S=6).
    N, C, W = 2, 256, 8
    num_stripes = 6
    stripe_h = 2                  # P = stripe_h * W = 16 (multiple of 16 for bf16 packing)
    H = num_stripes * stripe_h
    L = 128                       # local_conv_out_channels stand-in
    K = 100                       # num_classes (module default)

    key = jax.random.PRNGKey(0)
    k_feat, k_cw, k_cb, k_g, k_b, k_m, k_v, k_fw = jax.random.split(key, 8)

    # Backbone output in NHWC, bf16 (cast at the producer — the kernel never casts it).
    feat = jax.random.normal(k_feat, (N, H, W, C), dtype=jnp.float32).astype(jnp.bfloat16)

    params = {
        # Conv2d(C, L, 1) weight [L, C, 1, 1] stored transposed as [S, C, L]
        "conv_w": jax.random.normal(k_cw, (num_stripes, C, L), jnp.float32) * 0.02,
        "conv_b": jax.random.normal(k_cb, (num_stripes, 1, L), jnp.float32) * 0.01,
        # BatchNorm2d(L) parameters / running stats
        "bn_gamma": 1.0 + 0.1 * jax.random.normal(k_g, (num_stripes, 1, L), jnp.float32),
        "bn_beta": 0.1 * jax.random.normal(k_b, (num_stripes, 1, L), jnp.float32),
        "bn_mean": 0.1 * jax.random.normal(k_m, (num_stripes, 1, L), jnp.float32),
        "bn_var": 1.0 + 0.1 * jnp.abs(jax.random.normal(k_v, (num_stripes, 1, L), jnp.float32)),
        # Linear(L, K): init.normal(std=0.001), bias 0 — weight [K, L] stored as [S, L, K]
        "fc_w": jax.random.normal(k_fw, (num_stripes, L, K), jnp.float32) * 0.001,
        "fc_b": jnp.zeros((num_stripes, 1, K), jnp.float32),
    }

    feat_list, logit_list = pcb_forward(feat, params, num_stripes)
    jax.block_until_ready(feat_list)
    jax.block_until_ready(logit_list)

    ref_feat_list, ref_logit_list = pcb_reference(feat, params, num_stripes)
    for s in range(num_stripes):
        assert feat_list[s].shape == (N, L)
        assert logit_list[s].shape == (N, K)
        # bf16 weights / bf16 MXU inputs => bf16-level tolerance vs the f32 reference.
        assert jnp.allclose(feat_list[s], ref_feat_list[s], rtol=1e-2, atol=1e-3)
        assert jnp.allclose(logit_list[s], ref_logit_list[s], rtol=1e-2, atol=1e-3)

    print("KERNEL_OK")
</pallas_src>

<mosaic_0001>
module attributes {stable_mosaic.version = 11 : i64} {
  func.func @_pcb_head_kernel(%arg0: i32, %arg1: i32, %arg2: memref<2x1x16x256xbf16, #tpu.memory_space<vmem>>, %arg3: memref<1x256x128xbf16, #tpu.memory_space<vmem>>, %arg4: memref<1x1x128xf32, #tpu.memory_space<vmem>>, %arg5: memref<1x128x128xbf16, #tpu.memory_space<vmem>>, %arg6: memref<1x1x128xf32, #tpu.memory_space<vmem>>, %arg7: memref<1x2x128xf32, #tpu.memory_space<vmem>>, %arg8: memref<1x2x128xf32, #tpu.memory_space<vmem>>) attributes {dimension_semantics = [#tpu.dimension_semantics<parallel>, #tpu.dimension_semantics<parallel>], iteration_bounds = array<i64: 6, 1>, scalar_prefetch = 0 : i64, scratch_operands = 0 : i64, tpu.core_type = #tpu.core_type<tc>, window_params = [{transform_indices = @transform_0, window_bounds = array<i64: 2, 1, 16, 256>}, {transform_indices = @transform_1, window_bounds = array<i64: 1, 256, 128>}, {transform_indices = @transform_2, window_bounds = array<i64: 1, 1, 128>}, {transform_indices = @transform_3, window_bounds = array<i64: 1, 128, 128>}, {transform_indices = @transform_4, window_bounds = array<i64: 1, 1, 128>}, {transform_indices = @transform_5, window_bounds = array<i64: 1, 2, 128>}, {transform_indices = @transform_6, window_bounds = array<i64: 1, 2, 128>}]} {
    %c0 = arith.constant 0 : index
    %c0_0 = arith.constant 0 : index
    %c0_1 = arith.constant 0 : index
    %c0_2 = arith.constant 0 : index
    %0 = vector.load %arg2[%c0, %c0_0, %c0_1, %c0_2] : memref<2x1x16x256xbf16, #tpu.memory_space<vmem>>, vector<2x1x16x256xbf16>
    %1 = vector.shape_cast %0 : vector<2x1x16x256xbf16> to vector<2x16x256xbf16>
    %2 = arith.extf %1 : vector<2x16x256xbf16> to vector<2x16x256xf32>
    %cst = arith.constant dense<0.000000e+00> : vector<2x256xf32>
    %3 = vector.multi_reduction <add>, %2, %cst [1] : vector<2x16x256xf32> to vector<2x256xf32>
    %4 = arith.truncf %3 : vector<2x256xf32> to vector<2x256xbf16>
    %c0_3 = arith.constant 0 : index
    %c0_4 = arith.constant 0 : index
    %c0_5 = arith.constant 0 : index
    %5 = vector.load %arg3[%c0_3, %c0_4, %c0_5] : memref<1x256x128xbf16, #tpu.memory_space<vmem>>, vector<1x256x128xbf16>
    %6 = vector.shape_cast %5 : vector<1x256x128xbf16> to vector<256x128xbf16>
    %cst_6 = arith.constant dense<0.000000e+00> : vector<2x128xf32>
    %7 = tpu.matmul %4, %6, %cst_6 {dimension_numbers = #tpu.dot_dimension_numbers<[1], [0], [0], [1], [0, 0, 1, 1], [], []>} : vector<2x256xbf16>, vector<256x128xbf16>, vector<2x128xf32> -> vector<2x128xf32>
    %c0_7 = arith.constant 0 : index
    %c0_8 = arith.constant 0 : index
    %c0_9 = arith.constant 0 : index
    %8 = vector.load %arg4[%c0_7, %c0_8, %c0_9] : memref<1x1x128xf32, #tpu.memory_space<vmem>>, vector<1x1x128xf32>
    %9 = vector.shape_cast %8 : vector<1x1x128xf32> to vector<1x128xf32>
    %10 = vector.broadcast %9 : vector<1x128xf32> to vector<2x128xf32>
    %11 = arith.addf %7, %10 : vector<2x128xf32>
    %cst_10 = arith.constant 0.000000e+00 : f32
    %12 = vector.broadcast %cst_10 : f32 to vector<2x128xf32>
    %13 = arith.maximumf %11, %12 : vector<2x128xf32>
    %c0_11 = arith.constant 0 : index
    %c0_12 = arith.constant 0 : index
    %c0_13 = arith.constant 0 : index
    %14 = vector.load %arg7[%c0_11, %c0_12, %c0_13] : memref<1x2x128xf32, #tpu.memory_space<vmem>>, vector<1x2x128xf32>
    %15 = vector.shape_cast %14 : vector<1x2x128xf32> to vector<2x128xf32>
    %16 = vector.shape_cast %13 : vector<2x128xf32> to vector<1x2x128xf32>
    tpu.vector_store %arg7[%c0_11, %c0_12, %c0_13], %16 {strides = array<i32>} : memref<1x2x128xf32, #tpu.memory_space<vmem>>, vector<1x2x128xf32>,
    %17 = arith.truncf %13 : vector<2x128xf32> to vector<2x128xbf16>
    %c0_14 = arith.constant 0 : index
    %c0_15 = arith.constant 0 : index
    %c0_16 = arith.constant 0 : index
    %18 = vector.load %arg5[%c0_14, %c0_15, %c0_16] : memref<1x128x128xbf16, #tpu.memory_space<vmem>>, vector<1x128x128xbf16>
    %19 = vector.shape_cast %18 : vector<1x128x128xbf16> to vector<128x128xbf16>
    %cst_17 = arith.constant dense<0.000000e+00> : vector<2x128xf32>
    %20 = tpu.matmul %17, %19, %cst_17 {dimension_numbers = #tpu.dot_dimension_numbers<[1], [0], [0], [1], [0, 0, 1, 1], [], []>} : vector<2x128xbf16>, vector<128x128xbf16>, vector<2x128xf32> -> vector<2x128xf32>
    %c0_18 = arith.constant 0 : index
    %c0_19 = arith.constant 0 : index
    %c0_20 = arith.constant 0 : index
    %21 = vector.load %arg6[%c0_18, %c0_19, %c0_20] : memref<1x1x128xf32, #tpu.memory_space<vmem>>, vector<1x1x128xf32>
    %22 = vector.shape_cast %21 : vector<1x1x128xf32> to vector<1x128xf32>
    %23 = vector.broadcast %22 : vector<1x128xf32> to vector<2x128xf32>
    %24 = arith.addf %20, %23 : vector<2x128xf32>
    %c0_21 = arith.constant 0 : index
    %c0_22 = arith.constant 0 : index
    %c0_23 = arith.constant 0 : index
    %25 = vector.load %arg8[%c0_21, %c0_22, %c0_23] : memref<1x2x128xf32, #tpu.memory_space<vmem>>, vector<1x2x128xf32>
    %26 = vector.shape_cast %25 : vector<1x2x128xf32> to vector<2x128xf32>
    %27 = vector.shape_cast %24 : vector<2x128xf32> to vector<1x2x128xf32>
    tpu.vector_store %arg8[%c0_21, %c0_22, %c0_23], %27 {strides = array<i32>} : memref<1x2x128xf32, #tpu.memory_space<vmem>>, vector<1x2x128xf32>,
    return
  }
  func.func @transform_0(%arg0: i32, %arg1: i32) -> (i32, i32, i32, i32) {
    %c0_i32 = arith.constant 0 : i32
    %c0_i32_0 = arith.constant 0 : i32
    %c0_i32_1 = arith.constant 0 : i32
    return %arg1, %arg0, %c0_i32, %c0_i32_0 : i32, i32, i32, i32
  }
  func.func @transform_1(%arg0: i32, %arg1: i32) -> (i32, i32, i32) {
    %c0_i32 = arith.constant 0 : i32
    %c0_i32_0 = arith.constant 0 : i32
    %c0_i32_1 = arith.constant 0 : i32
    return %arg0, %c0_i32, %c0_i32_0 : i32, i32, i32
  }
  func.func @transform_2(%arg0: i32, %arg1: i32) -> (i32, i32, i32) {
    %c0_i32 = arith.constant 0 : i32
    %c0_i32_0 = arith.constant 0 : i32
    %c0_i32_1 = arith.constant 0 : i32
    return %arg0, %c0_i32, %c0_i32_0 : i32, i32, i32
  }
  func.func @transform_3(%arg0: i32, %arg1: i32) -> (i32, i32, i32) {
    %c0_i32 = arith.constant 0 : i32
    %c0_i32_0 = arith.constant 0 : i32
    %c0_i32_1 = arith.constant 0 : i32
    return %arg0, %c0_i32, %c0_i32_0 : i32, i32, i32
  }
  func.func @transform_4(%arg0: i32, %arg1: i32) -> (i32, i32, i32) {
    %c0_i32 = arith.constant 0 : i32
    %c0_i32_0 = arith.constant 0 : i32
    %c0_i32_1 = arith.constant 0 : i32
    return %arg0, %c0_i32, %c0_i32_0 : i32, i32, i32
  }
  func.func @transform_5(%arg0: i32, %arg1: i32) -> (i32, i32, i32) {
    %c0_i32 = arith.constant 0 : i32
    %c0_i32_0 = arith.constant 0 : i32
    return %arg0, %arg1, %c0_i32 : i32, i32, i32
  }
  func.func @transform_6(%arg0: i32, %arg1: i32) -> (i32, i32, i32) {
    %c0_i32 = arith.constant 0 : i32
    %c0_i32_0 = arith.constant 0 : i32
    return %arg0, %arg1, %c0_i32 : i32, i32, i32
  }
}

</mosaic_0001>

<bundles_post_ra>
// kernel: tpu_custom_call.1
= control target key start
LH: loop header
LB: loop body
LE: loop exit
PB: predicated region body
PF: predicated region fallthrough
CT: control target
= control target key end

     0   :  { %s1752_s0 = inlined_call_operand.hbm [shape: bf16[2,6,16,256], index: 0, kind: input, shape index: {}]   ;;  %s1753_s1 = inlined_call_operand.hbm [shape: bf16[6,256,128], index: 1, kind: input, shape index: {}]   ;;  %s1754_s2 = inlined_call_operand.vmem [shape: f32[6,1,128], index: 2, kind: input, shape index: {}]   ;;  %s1755_s3 = inlined_call_operand.hbm [shape: bf16[6,128,128], index: 3, kind: input, shape index: {}]   ;;  %s1756_s4 = inlined_call_operand.vmem [shape: f32[6,1,128], index: 4, kind: input, shape index: {}]   ;;  %s1757_s5 = inlined_call_operand.hbm [shape: f32[6,2,128], index: 5, kind: output, shape index: {0}]   ;;  %s1758_s6 = inlined_call_operand.hbm [shape: f32[6,2,128], index: 6, kind: output, shape index: {1}]  }
   0x1   :  { %1763 = sst [smem:[#allocation22_spill]] %s1752_s0 }
   0x2   :  { %12 = vsyncpa [#allocation3], 0 }
   0x3   :  { %14 = vsyncpa [#allocation3 + $0x1], 0 }
   0x4   :  { %15 = vsyncpa [#allocation6], 0 }
   0x5   :  { %17 = vsyncpa [#allocation6 + $0x1], 0 }
   0x6   :  { %18 = vsyncpa [#allocation4], 0 }
   0x7   :  { %20 = vsyncpa [#allocation4 + $0x1], 0 }
   0x8   :  { %21 = vsyncpa [#allocation10], 0 }
   0x9   :  { %23 = vsyncpa [#allocation10 + $0x1], 0  ;;  %s1432_s21 = smov 0   ;;  %s1434_s22 = smov 0  }
   0xa   :  { %s1436_s23 = smov 0   ;;  %s1438_s24 = smov 0  }
   0xb   :  { %s1440_s25 = smov 0   ;;  %s1442_s26 = smov 0  }
   0xc LB: > { %1764 = sst [smem:[#allocation18_spill]] %s1369_s23  ;;  %s1463_s27 = sadd.s32 4294967295, %s1381_s26   ;;  %s1381_s26 = sphi %s1442_s26, %s29_s26   ;;  %s1377_s25 = sphi %s1440_s25, %s1782_s25   ;;  %s1373_s24 = sphi %s1438_s24, %s1781_s24   ;;  %s1369_s23 = sphi %s1436_s23, %s1777_s23   ;;  %s1365_s22 = sphi %s1434_s22, %s1780_s22   ;;  %s1361_s21 = sphi %s1432_s21, %s1779_s21  }
   0xd   : > { %s994_s28 = sadd.s32 4294967294, %s1381_s26   ;;  %s41_s29 = sadd.s32 1, %s1377_s25 }
   0xe   : > { %s50_s30 = sadd.s32 1, %s1369_s23  ;;  %p43_p0 = scmp.ge.s32.totalorder %s41_s29, 6 }
   0xf   : > { %p57_p1 = scmp.ne.s32.totalorder %s1369_s23, %s1365_s22  ;;  %p58_p2 = scmp.eq.s32.totalorder %s1381_s26, 0 }
  0x10   : > { %p63_p3 = scmp.ne.s32.totalorder %s1365_s22, %s1361_s21  ;;  %s1784_s29 = smov (%p43_p0, %s41_s29), 0 }
  0x11   : > { %1765 = sst [smem:[#allocation19_spill]] %s1784_s29  ;;  %p1475_p4 = por %p58_p2, %p57_p1 }
  0x12   : > { %p64_p5 = scmp.eq.s32.totalorder %s1463_s27, 0  ;;  %s46_s8 = ssub.s32 %s1377_s25, %s1784_s29 }
  0x13   : > { %p193_p6 = scmp.eq.s32.totalorder %s1463_s27, 5  ;;  %p48_p7 = scmp.eq.s32.totalorder %s46_s8, 0 }
  0x14   : > { %p1483_p8 = por %p64_p5, %p63_p3  ;;  %p199_p10 = scmp.eq.s32.totalorder %s994_s28, 5 }
  0x15   : > { %p1487_p9 = por %p193_p6, %p57_p1  ;;  %p996_p12 = scmp.ge.s32.totalorder %s1381_s26, 6 }
  0x16   : > { %s1492_s11 = scalar_select %p48_p7, %s1369_s23, %s50_s30  }
  0x17   : > { %s1768_s10 = scalar_select %p1487_p9, 1, 0 }
  0x18   : > { %1769 = sst [smem:[#allocation20_spill]] %s1492_s11  ;;  %p1494_p11 = por %p199_p10, %p63_p3 }
  0x19   : > { %243 = sbr.rel (%p996_p12) target bundleno = 96 (0x60), region = 16 }
  0x1a   : > { %s1770_s12 = scalar_select %p1494_p11, 1, 0 }
  0x1c   : > { %1771 = sst [smem:[#allocation21_spill]] %s1770_s12 }
  0x20   : > { %s1500_s13 = sand.u32 1, %s1369_s23   ;;  %s1046_s14 = sshll.u32 %s1377_s25, 8 }
  0x21   : > { %s997_s15 = sshll.u32 %s1500_s13, 5  ;;  %s1772_s0 = sld [smem:[#allocation22_spill]] }
  0x22   : > { %s1100_s19 = scalar_select %p1475_p4, [#allocation0], [#allocation13] }
  0x23   : > { %s251_s20 = scalar_lea.vmem [#allocation2], %s997_s15  ;;  %s1383_s8 = smov 1536  }
  0x24   : > { %s273_s28 = sshll.u32 %s251_s20, 4  ;;  %s265_s30 = sld [smem:[%s1100_s19]]   ;;  %s274_s28 = int_to_ptr.vmem [resolvable:$true] %s273_s28 }
  0x25   : > { %1101 = sst [smem:[#allocation12]] (%p1475_p4), %s1383_s8  ;;  %s1384_s29 = smov 256  }
  0x26   : > { %1102 = sst [smem:[#allocation12 + $0x1]] (%p1475_p4), %s1384_s29  ;;  %s1385_s11 = smov 2  }
  0x27   : > { %s260_s18 = scalar_lea.hbm %s1772_s0, %s1046_s14  ;;  %1103 = sst [smem:[#allocation12 + $0x2]] (%p1475_p4), %s1385_s11 }
  0x28   : > { %s1386_s16 = smov 128   ;;  %s1387_s15 = smov 8  }
  0x29   : > { %1104 = sst [smem:[#allocation12 + $0x3]] (%p1475_p4), %s1386_s16  ;;  %s248_s19 = scalar_lea.sflag [#allocation3], %s1500_s13 }
  0x2a   : > { %1105 = sst [smem:[#allocation12 + $0x4]] (%p1475_p4), %s1386_s16  ;;  %s1000_s14 = sshll.u32 %s265_s30, 26 }
  0x2b   : > { %1106 = sst [smem:[#allocation12 + $0x5]] (%p1475_p4), %s1387_s15  ;;  %s1001_s17 = sadd.s32 134217728, %s1000_s14 }
  0x2c   : > { %s1388_s20 = smov [#allocation11]   ;;  %s296_s29 = sand.u32 1, %s1381_s26  }
  0x2d   : > { %1107 = dma.general (%p1475_p4), %s260_s18, 512, %s274_s28, %s248_s19, %s1388_s20, [#allocation12], %s1001_s17, 0  }
  0x2e   : > { %s1002_s11 = sshll.u32 %s1500_s13, 7  ;;  %s1047_s8 = sshll.u32 %s1377_s25, 11 }
  0x2f   : > { %s300_s0 = scalar_lea.vmem [#allocation5], %s1002_s11  ;;  %s1530_s30 = scalar_lea.hbm %s1753_s1, %s1047_s8 }
  0x30   : > { %s307_s23 = sshll.u32 %s300_s0, 4  ;;  %s1534_s18 = scalar_lea.sflag [#allocation6], %s296_s29  ;;  %s1532_s23 = int_to_ptr.vmem [resolvable:$true] %s307_s23 }
  0x31   : > { %s1207_s28 = scalar_lea.hbm %s1530_s30, 2048  ;;  %s1211_s15 = scalar_lea.hbm %s1753_s1, 12288 }
  0x32   : > { %p1208_p13 = scmp.ne.s32.totalorder %s1530_s30, %s1207_s28  ;;  %p1212_p2 = scmp.lt.u32.totalorder %s1530_s30, %s1753_s1 }
  0x33   : > { %p1213_p3 = scmp.lt.u32.totalorder %s1211_s15, %s1207_s28  ;;  %p1215_p6 = scmp.lt.u32.totalorder %s1207_s28, %s1530_s30 }
  0x34   : > { %p1209_p0 = pnand %p1208_p13, %p1475_p4 }
  0x35   : > { %p1214_p5 = por %p1213_p3, %p1212_p2 }
  0x36   : > { %p1210_p1 = pneg %p1209_p0 }
  0x37   : > { %p1216_p7 = por %p1215_p6, %p1214_p5 }
  0x39   : > { %p1217_p10 = pnand %p1216_p7, %p1210_p1 }
  0x3b   : > { %1220 = shalt.err (!%p1217_p10)
}
  0x3c   : > { %s1221_s19 = scalar_lea.vmem %s1532_s23, 2048  ;;  %s1389_s20 = smov [#allocation5]  }
  0x3d   : > { %p1222_p12 = scmp.ne.s32.totalorder %s1532_s23, %s1221_s19  ;;  %s1225_s29 = sshll.u32 %s1389_s20, 4  ;;  %s1226_s29 = int_to_ptr.vmem [resolvable:$false] %s1225_s29 }
  0x3e   : > { %s1227_s11 = scalar_lea.vmem %s1226_s29, 4096  ;;  %p1228_p11 = scmp.lt.s32.totalorder %s1532_s23, %s1226_s29 }
  0x3f   : > { %p1223_p13 = pnand %p1222_p12, %p1475_p4  ;;  %p1229_p9 = scmp.lt.s32.totalorder %s1227_s11, %s1221_s19 }
  0x41   : > { %p1224_p0 = pneg %p1223_p13  ;;  %p1230_p2 = por %p1229_p9, %p1228_p11 }
  0x43   : > { %p1231_p3 = pnand %p1230_p2, %p1224_p0 }
  0x45   : > { %1234 = shalt.err (!%p1231_p3)
}
  0x46   : > { %s1390_s8 = smov 64   ;;  %s1391_s16 = smov 4  }
  0x47   : > { %1108 = dma.hbm_to_vmem [thread:$0]  (%p1475_p4), %s1530_s30, 2048, %s1532_s23, %s1534_s18, %s1390_s8, %s1390_s8, %s1391_s16  }
  0x48   : > { %s1005_s28 = sshll.u32 %s1500_s13, 6  ;;  %s1048_s14 = sshll.u32 %s1377_s25, 10 }
  0x49   : > { %s1566_s12 = scalar_lea.hbm %s1755_s3, %s1048_s14  ;;  %s327_s17 = scalar_lea.vmem [#allocation7], %s1005_s28 }
  0x4a   : > { %s334_s19 = sshll.u32 %s327_s17, 4  ;;  %s1235_s20 = scalar_lea.hbm %s1566_s12, 1024  ;;  %s1568_s19 = int_to_ptr.vmem [resolvable:$true] %s334_s19 }
  0x4b   : > { %p1236_p9 = scmp.ne.s32.totalorder %s1566_s12, %s1235_s20  ;;  %s1239_s30 = scalar_lea.hbm %s1755_s3, 6144 }
  0x4c   : > { %p1240_p5 = scmp.lt.u32.totalorder %s1566_s12, %s1755_s3  ;;  %p1241_p6 = scmp.lt.u32.totalorder %s1239_s30, %s1235_s20 }
  0x4d   : > { %p1237_p11 = pnand %p1236_p9, %p1475_p4  ;;  %p1243_p10 = scmp.lt.u32.totalorder %s1235_s20, %s1566_s12 }
  0x4e   : > { %p1242_p7 = por %p1241_p6, %p1240_p5 }
  0x4f   : > { %p1238_p1 = pneg %p1237_p11 }
  0x50   : > { %p1244_p12 = por %p1243_p10, %p1242_p7 }
  0x52   : > { %p1245_p13 = pnand %p1244_p12, %p1238_p1 }
  0x54   : > { %1248 = shalt.err (!%p1245_p13)
}
  0x55   : > { %s1249_s28 = scalar_lea.vmem %s1568_s19, 1024  ;;  %s1392_s14 = smov [#allocation7]  }
  0x56   : > { %p1250_p0 = scmp.ne.s32.totalorder %s1568_s19, %s1249_s28  ;;  %s1253_s0 = sshll.u32 %s1392_s14, 4  ;;  %s1254_s0 = int_to_ptr.vmem [resolvable:$false] %s1253_s0 }
  0x57   : > { %s1255_s15 = scalar_lea.vmem %s1254_s0, 2048  ;;  %p1256_p9 = scmp.lt.s32.totalorder %s1568_s19, %s1254_s0 }
  0x58   : > { %p1251_p2 = pnand %p1250_p0, %p1475_p4  ;;  %p1257_p11 = scmp.lt.s32.totalorder %s1255_s15, %s1249_s28 }
  0x5a   : > { %p1252_p3 = pneg %p1251_p2  ;;  %p1258_p5 = por %p1257_p11, %p1256_p9 }
  0x5c   : > { %p1259_p6 = pnand %p1258_p5, %p1252_p3 }
  0x5e   : > { %1262 = shalt.err (!%p1259_p6)
}
  0x5f   : > { %1109 = dma.hbm_to_vmem [thread:$0]  (%p1475_p4), %s1566_s12, 1024, %s1568_s19, %s1534_s18, %s1390_s8, %s1390_s8, %s1391_s16  }
  0x60 PF: > { %p1008_p1 = scmp.ge.s32.totalorder %s1381_s26, 1  ;;  %p348_p7 = scmp.lt.s32.totalorder %s1381_s26, 7 }
  0x62   : > { %p349_p10 = pnand %p1008_p1, %p348_p7 }
  0x63   : > { %s1598_s17 = sand.u32 (!%p349_p10), 1, %s1365_s22  }
  0x64   : > { %352 = sbr.rel (%p349_p10) target bundleno = 593 (0x251), region = 40  ;;  %s1009_s7 = sshll.u32 (!%p349_p10), %s1598_s17, 5 }
  0x65   : > { %s355_s20 = scalar_lea.sflag (!%p349_p10), [#allocation3], %s1598_s17  ;;  %s1602_s23 = scalar_lea.vmem (!%p349_p10), [#allocation2], %s1009_s7 }
  0x6b   : > { %1344 = dma.done.wait (%p1483_p8), %s355_s20, 512  }
  0x6c   : > { %1346 = vsyncadd (%p1483_p8), %s355_s20, 4294966784  ;;  %s363_s18 = sand.u32 1, %s1463_s27   ;;  %s1010_s8 = sshll.u32 %s1598_s17, 7 }
  0x6d   : > { %s364_s16 = scalar_lea.sflag [#allocation6], %s363_s18  ;;  %s1610_s12 = scalar_lea.vmem [#allocation5], %s1010_s8 }
  0x6e   : > { %1348 = dma.done.wait (%p1483_p8), %s364_s16, 3072  }
  0x6f   : > { %1350 = vsyncadd (%p1483_p8), %s364_s16, 4294964224  ;;  %v1393_v0 = vmov 0.0   ;;  %v1183_v1 = vld [vmem:[%s1610_s12 + $0x40] sm:$0xff]   ;;  %v1185_v3 = vld [vmem:[%s1610_s12 + $0x48] sm:$0xff]   ;;  %s1011_s27 = sshll.u32 %s1598_s17, 6  ;;  %vm525_vm0 = vcmask 1041409  }
  0x70   : > { %1080 = vmatprep.subr.bf16.mxu1 %v1393_v0  ;;  %v1184_v2 = vld [vmem:[%s1610_s12] sm:$0xff]   ;;  %1049 = vmatprep.subr.bf16.mxu0 %v1183_v1  ;;  %v1186_v4 = vld [vmem:[%s1610_s12 + $0x8] sm:$0xff]   ;;  %v1187_v5 = vld [vmem:[%s1610_s12 + $0x50] sm:$0xff]   ;;  %s1634_s9 = scalar_lea.vmem [#allocation7], %s1011_s27  ;;  %vm1394_vm1 = vmmov 0   ;;  %p427_p4 = scmp.lt.s32.totalorder %s1373_s24, 5 }
  0x71   : > { %1050 = vmatpush3.bf16.msra.mxu0 %v1184_v2  ;;  %v1188_v6 = vld [vmem:[%s1610_s12 + $0x10] sm:$0xff]   ;;  %v1189_v7 = vld [vmem:[%s1610_s12 + $0x58] sm:$0xff]   ;;  %v1191_v9 = vld [vmem:[%s1610_s12 + $0x60] sm:$0xff]   ;;  %1096 = vmatprep.mubr.msk.bf16.mxu1 %vm1394_vm1, %v1393_v0  ;;  %s1012_s11 = sshll.u32 %s1598_s17, 1  ;;  %s1042_s14 = sshll.u32 %s1373_s24, 5 }
  0x72   : > { %1051 = vmatprep.subr.bf16.mxu0 %v1185_v3  ;;  %v1190_v8 = vld [vmem:[%s1610_s12 + $0x18] sm:$0xff]   ;;  %v1192_v10 = vld [vmem:[%s1610_s12 + $0x20] sm:$0xff]   ;;  %v1193_v11 = vld [vmem:[%s1610_s12 + $0x68] sm:$0xff]   ;;  %s1658_s19 = scalar_select %p427_p4, %s1373_s24, 5 }
  0x73   : > { %v434_v12 = vld [vmem:[%s1602_s23] sm:$0xff]  ;;  %v435_v13 = vld [vmem:[%s1602_s23 + $0x8] sm:$0xff]  ;;  %v436_v14 = vld [vmem:[%s1602_s23 + $0x10] sm:$0xff]  ;;  %s418_s28 = scalar_lea.vmem [#allocation8], %s1012_s11  ;;  %s1673_s20 = scalar_lea.hbm %s1757_s5, %s1042_s14 }
  0x74   : > { %v1194_v15 = vld [vmem:[%s1610_s12 + $0x28] sm:$0xff]   ;;  %v437_v16 = vld [vmem:[%s1602_s23 + $0x18] sm:$0xff]  ;;  %v438_v17 = vunpack.c.l.bf16 %v434_v12  ;;  %v439_v18 = vunpack.c.h.bf16 %v434_v12  ;;  %v440_v19 = vunpack.c.l.bf16 %v435_v13  ;;  %v441_v20 = vunpack.c.h.bf16 %v435_v13  ;;  %v1199_v25 = vld [vmem:[%s1634_s9] sm:$0xff]   ;;  %s429_s29 = scalar_lea.vmem %s1754_s2, %s1658_s19  ;;  %s803_s0 = sshll.u32 %s418_s28, 4  ;;  %s804_s0 = int_to_ptr.vmem [resolvable:$true] %s803_s0 }
  0x75   : > { %1052 = vmatpush3.bf16.msra.mxu0 %v1186_v4  ;;  %v442_v21 = vunpack.c.l.bf16 %v436_v14  ;;  %v443_v22 = vunpack.c.h.bf16 %v436_v14  ;;  %v444_v23 = vunpack.c.l.bf16 %v437_v16  ;;  %v445_v24 = vunpack.c.h.bf16 %v437_v16  ;;  %v1195_v26 = vld [vmem:[%s1610_s12 + $0x70] sm:$0xff]   ;;  %1081 = vmatpush3.bf16.msra.mxu1 %v1199_v25  ;;  %v1200_v31 = vld [vmem:[%s1634_s9 + $0x8] sm:$0xff]   ;;  %v1197_v35 = vld [vmem:[%s1610_s12 + $0x78] sm:$0xff]   ;;  %s784_s23 = scalar_lea.sflag [#allocation4], %s1598_s17  ;;  %s1263_s18 = scalar_lea.vmem %s804_s0, 32 }
  0x76   : > { %1053 = vmatprep.subr.bf16.mxu0 %v1187_v5  ;;  %v453_v27 = vadd.f32 %v441_v20, %v439_v18  ;;  %v446_v28 = vadd.f32 %v440_v19, %v438_v17  ;;  %v1196_v32 = vld [vmem:[%s1610_s12 + $0x30] sm:$0xff]   ;;  %1082 = vmatprep.subr.bf16.mxu1 %v1393_v0  ;;  %v1198_v47 = vld [vmem:[%s1610_s12 + $0x38] sm:$0xff]   ;;  %v1203_v61 = vld [vmem:[%s1634_s9 + $0x20] sm:$0xff]   ;;  %p1264_p8 = scmp.ne.s32.totalorder %s804_s0, %s1263_s18  ;;  %p1773_p12 = scmp.ne.s32.totalorder %s1768_s10, 0 }
  0x77   : > { %v467_v29 = vadd.f32 %v445_v24, %v443_v22  ;;  %v460_v30 = vadd.f32 %v444_v23, %v442_v21  ;;  %v1201_v40 = vld [vmem:[%s1634_s9 + $0x10] sm:$0xff]   ;;  %v1202_v52 = vld [vmem:[%s1634_s9 + $0x18] sm:$0xff]   ;;  %s1395_s8 = smov [#allocation8]  }
  0x78   : > { %v454_v33 = vrot.slane %v453_v27, 4  ;;  %v447_v34 = vrot.slane %v446_v28, 4  ;;  %v1205_v12 = vld [vmem:[%s1634_s9 + $0x30] sm:$0xff]   ;;  %v1206_v13 = vld [vmem:[%s1634_s9 + $0x38] sm:$0xff]   ;;  %p1265_p13 = pnand %p1264_p8, %p1773_p12  ;;  %s1267_s16 = sshll.u32 %s1395_s8, 4  ;;  %s1268_s16 = int_to_ptr.vmem [resolvable:$false] %s1267_s16 }
  0x79   : > { %1054 = vmatpush3.bf16.msra.mxu0 %v1188_v6  ;;  %v468_v36 = vrot.slane %v467_v29, 4  ;;  %v461_v37 = vrot.slane %v460_v30, 4  ;;  %1083 = vmatpush3.bf16.msra.mxu1 %v1200_v31  ;;  %s1269_s12 = scalar_lea.vmem %s1268_s16, 64  ;;  %p1270_p2 = scmp.lt.s32.totalorder %s804_s0, %s1268_s16 }
  0x7a   : > { %1055 = vmatprep.subr.bf16.mxu0 %v1189_v7  ;;  %v455_v38 = vadd.f32 %v454_v33, %v453_v27  ;;  %v448_v39 = vadd.f32 %v447_v34, %v446_v28  ;;  %1084 = vmatprep.subr.bf16.mxu1 %v1393_v0  ;;  %v1204_v7 = vld [vmem:[%s1634_s9 + $0x28] sm:$0xff]   ;;  %p1266_p0 = pneg %p1265_p13  ;;  %p1271_p3 = scmp.lt.s32.totalorder %s1269_s12, %s1263_s18 }
  0x7b   : > { %v469_v41 = vadd.f32 %v468_v36, %v467_v29  ;;  %v462_v42 = vadd.f32 %v461_v37, %v460_v30 }
  0x7c   : > { %v456_v43 = vrot.slane %v455_v38, 2  ;;  %v449_v44 = vrot.slane %v448_v39, 2  ;;  %p1272_p9 = por %p1271_p3, %p1270_p2 }
  0x7d   : > { %1056 = vmatpush3.bf16.msra.mxu0 %v1190_v8  ;;  %v470_v45 = vrot.slane %v469_v41, 2  ;;  %v463_v46 = vrot.slane %v462_v42, 2  ;;  %1085 = vmatpush3.bf16.msra.mxu1 %v1201_v40 }
  0x7e   : > { %1057 = vmatprep.subr.bf16.mxu0 %v1191_v9  ;;  %v457_v48 = vadd.f32 %v456_v43, %v455_v38  ;;  %v450_v49 = vadd.f32 %v449_v44, %v448_v39  ;;  %1086 = vmatprep.subr.bf16.mxu1 %v1393_v0  ;;  %p1273_p11 = pnand %p1272_p9, %p1266_p0 }
  0x7f   : > { %v471_v50 = vadd.f32 %v470_v45, %v469_v41  ;;  %v464_v51 = vadd.f32 %v463_v46, %v462_v42 }
  0x80   : > { %v458_v53 = vrot.slane %v457_v48, 1  ;;  %v451_v54 = vrot.slane %v450_v49, 1 }
  0x81   : > { %1058 = vmatpush3.bf16.msra.mxu0 %v1192_v10  ;;  %v472_v55 = vrot.slane %v471_v50, 1  ;;  %v465_v56 = vrot.slane %v464_v51, 1  ;;  %1087 = vmatpush3.bf16.msra.mxu1 %v1202_v52 }
  0x82   : > { %1059 = vmatprep.subr.bf16.mxu0 %v1193_v11  ;;  %v459_v57 = vadd.f32 %v458_v53, %v457_v48  ;;  %v452_v58 = vadd.f32 %v451_v54, %v450_v49  ;;  %1088 = vmatprep.subr.bf16.mxu1 %v1393_v0 }
  0x83   : > { %v473_v59 = vadd.f32 %v472_v55, %v471_v50  ;;  %v466_v60 = vadd.f32 %v465_v56, %v464_v51 }
  0x84   : > { %v475_v62 = vpack.c.bf16 %v459_v57, %v459_v57  ;;  %v474_v63 = vpack.c.bf16 %v452_v58, %v452_v58 }
  0x85   : > { %1060 = vmatpush3.bf16.msra.mxu0 %v1194_v15  ;;  %v477_v1 = vpack.c.bf16 %v473_v59, %v473_v59  ;;  %v476_v2 = vpack.c.bf16 %v466_v60, %v466_v60  ;;  %1089 = vmatpush3.bf16.msra.mxu1 %v1203_v61  ;;  %v1014_v15 = vld [vmem:[%s429_s29] ss:$0 sm:$0xff] }
  0x86   : > { %1061 = vmatprep.subr.bf16.mxu0 %v1195_v26  ;;  %v522_v3 = vunpack.c.l.b16 %v475_v62  ;;  %v521_v4 = vunpack.c.l.b16 %v474_v63  ;;  %1090 = vmatprep.subr.bf16.mxu1 %v1393_v0 }
  0x87   : > { %v524_v5 = vunpack.c.l.b16 %v477_v1  ;;  %v523_v6 = vunpack.c.l.b16 %v476_v2 }
  0x89   : > { %1062 = vmatpush3.bf16.msra.mxu0 %v1196_v32  ;;  %v527_v8 = vsel %vm525_vm0, %v524_v5, %v522_v3  ;;  %v526_v9 = vsel %vm525_vm0, %v523_v6, %v521_v4  ;;  %1091 = vmatpush3.bf16.msra.mxu1 %v1204_v7 }
  0x8a   : > { %1063 = vmatprep.subr.bf16.mxu0 %v1197_v35  ;;  %v529_v10 = vpack.c.b16 %v527_v8, %v527_v8  ;;  %v528_v11 = vpack.c.b16 %v526_v9, %v526_v9  ;;  %1092 = vmatprep.subr.bf16.mxu1 %v1393_v0 }
  0x8c   : > { %660 = vmatprep.mubr.bf16.mxu0 %v529_v10 }
  0x8d   : > { %1064 = vmatpush3.bf16.msra.mxu0 %v1198_v47  ;;  %1093 = vmatpush3.bf16.msra.mxu1 %v1205_v12 }
  0x8e   : > { %1094 = vmatprep.subr.bf16.mxu1 %v1393_v0 }
  0x90   : > { %661 = vmatmul.mubr.bf16.vlgmr.msra.gmra.mrb[0].mxu0 %v528_v11 }
  0x91   : > { %1095 = vmatpush3.bf16.msra.mxu1 %v1206_v13 }
 0x163   : > { %v1065_v14 = vpop.f32.mrb[0].mxu0 }
 0x164   : > { %v1066_v16 = vpop.f32.mrb[1].mxu0 }
 0x165   : > { %v1067_v17 = vadd.f32 %v1066_v16, %v1065_v14  ;;  %v1068_v18 = vpop.f32.mrb[2].mxu0 }
 0x166   : > { %v1069_v19 = vpop.f32.mrb[3].mxu0 }
 0x167   : > { %v663_v0 = vadd.f32 %v1067_v17, %v1014_v15 }
 0x169   : > { %v668_v20 = vmax.f32 %v663_v0, 0.0 }
 0x16b   : > { %v670_v21 = vpack.c.bf16 %v668_v20, %v668_v20  ;;  %669 = vst [vmem:[%s418_s28] sm:$0x3] %v668_v20 }
 0x16d   : > { %1097 = vmatmul.mubr.bf16.vlgmr.msra.gmra.mrb[0].mxu1 %v670_v21 }
 0x16e   : > { %1276 = shalt.err (!%p1273_p11)
}
 0x16f   : > { %s1277_s27 = scalar_lea.hbm %s1673_s20, 32  ;;  %s1281_s30 = scalar_lea.hbm %s1757_s5, 192 }
 0x170   : > { %p1278_p5 = scmp.ne.s32.totalorder %s1673_s20, %s1277_s27  ;;  %p1282_p7 = scmp.lt.u32.totalorder %s1673_s20, %s1757_s5 }
 0x171   : > { %p1283_p10 = scmp.lt.u32.totalorder %s1281_s30, %s1277_s27  ;;  %p1285_p8 = scmp.lt.u32.totalorder %s1277_s27, %s1673_s20 }
 0x172   : > { %p1279_p6 = pnand %p1278_p5, %p1773_p12 }
 0x173   : > { %p1284_p4 = por %p1283_p10, %p1282_p7 }
 0x174   : > { %p1280_p1 = pneg %p1279_p6 }
 0x175   : > { %p1286_p13 = por %p1285_p8, %p1284_p4 }
 0x177   : > { %p1287_p0 = pnand %p1286_p13, %p1280_p1 }
 0x179   : > { %1290 = shalt.err (!%p1287_p0)
}
 0x17a   : > { %1113 = dma.vmem_to_hbm [thread:$0]  (%p1773_p12), %s804_s0, 32, %s1673_s20, %s784_s23  }
 0x17b   : > { %s432_s18 = scalar_lea.vmem %s1756_s4, %s1658_s19  ;;  %s425_s8 = scalar_lea.vmem [#allocation9], %s1012_s11 }
 0x17c   : > { %v1031_v22 = vld [vmem:[%s432_s18] ss:$0 sm:$0xff]  ;;  %s817_s16 = sshll.u32 %s425_s8, 4  ;;  %s1704_s9 = scalar_lea.hbm %s1758_s6, %s1042_s14  ;;  %s1706_s16 = int_to_ptr.vmem [resolvable:$true] %s817_s16 }
 0x17d   : > { %s789_s19 = scalar_lea.sflag [#allocation10], %s1598_s17  ;;  %s1291_s11 = scalar_lea.vmem %s1706_s16, 32 }
 0x17e   : > { %p1292_p2 = scmp.ne.s32.totalorder %s1706_s16, %s1291_s11  ;;  %s1396_s24 = smov [#allocation9]  }
 0x17f   : > { %s1295_s0 = sshll.u32 %s1396_s24, 4  ;;  %s1296_s0 = int_to_ptr.vmem [resolvable:$false] %s1295_s0 }
 0x180   : > { %p1293_p3 = pnand %p1292_p2, %p1773_p12  ;;  %s1297_s20 = scalar_lea.vmem %s1296_s0, 64 }
 0x181   : > { %p1298_p11 = scmp.lt.s32.totalorder %s1706_s16, %s1296_s0  ;;  %p1299_p5 = scmp.lt.s32.totalorder %s1297_s20, %s1291_s11 }
 0x182   : > { %p1294_p9 = pneg %p1293_p3 }
 0x183   : > { %p1300_p6 = por %p1299_p5, %p1298_p11 }
 0x185   : > { %p1301_p1 = pnand %p1300_p6, %p1294_p9 }
 0x240   : > { %v776_v23 = vpop.f32.mrb[0].mxu1 }
 0x241   : > { %v777_v24 = vadd.f32 %v1031_v22, %v776_v23  ;;  %v1098_v25 = vpop.f32.mrb[1].mxu1 }
 0x242   : > { %v779_v26 = vpop.f32.mrb[2].mxu1 }
 0x243   : > { %782 = vst [vmem:[%s425_s8] sm:$0x3] %v777_v24  ;;  %v1099_v27 = vpop.f32.mrb[3].mxu1 }
 0x244   : > { %1304 = shalt.err (!%p1301_p1)
}
 0x245   : > { %s1305_s17 = scalar_lea.hbm %s1704_s9, 32  ;;  %s1309_s13 = scalar_lea.hbm %s1758_s6, 192 }
 0x246   : > { %p1306_p7 = scmp.ne.s32.totalorder %s1704_s9, %s1305_s17  ;;  %p1310_p8 = scmp.lt.u32.totalorder %s1704_s9, %s1758_s6 }
 0x247   : > { %p1311_p13 = scmp.lt.u32.totalorder %s1309_s13, %s1305_s17  ;;  %p1313_p2 = scmp.lt.u32.totalorder %s1305_s17, %s1704_s9 }
 0x248   : > { %p1307_p10 = pnand %p1306_p7, %p1773_p12 }
 0x249   : > { %p1312_p0 = por %p1311_p13, %p1310_p8 }
 0x24a   : > { %p1308_p4 = pneg %p1307_p10 }
 0x24b   : > { %p1314_p3 = por %p1313_p2, %p1312_p0 }
 0x24d   : > { %p1315_p9 = pnand %p1314_p3, %p1308_p4 }
 0x24f   : > { %1318 = shalt.err (!%p1315_p9)
}
 0x250   : > { %1114 = dma.vmem_to_hbm [thread:$0]  (%p1773_p12), %s1706_s16, 32, %s1704_s9, %s789_s19  }
 0x251 PF: > { %s1774_s28 = sld [smem:[#allocation21_spill]]  ;;  %p1124_p11 = scmp.ge.s32.totalorder %s1381_s26, 2 }
 0x252   : > { %s829_s15 = sand.u32 1, %s1361_s21  }
 0x253   : > { %s830_s7 = scalar_lea.sflag [#allocation4], %s829_s15 }
 0x257   : > { %p1775_p5 = scmp.ne.s32.totalorder %s1774_s28, 0 }
 0x259   : > { %p1118_p6 = pnand %p1124_p11, %p1775_p5 }
 0x25b   : > { %1352 = dma.done.wait (!%p1118_p6), %s830_s7, 32  }
 0x25c   : > { %1354 = vsyncadd (!%p1118_p6), %s830_s7, 4294967264  ;;  %s839_s18 = scalar_lea.sflag [#allocation10], %s829_s15 }
 0x25d   : > { %1356 = dma.done.wait (!%p1118_p6), %s839_s18, 32  }
 0x25e   : > { %1358 = vsyncadd (!%p1118_p6), %s839_s18, 4294967264  ;;  %s29_s26 = sadd.s32 1, %s1381_s26   ;;  %s1776_s10 = sld [smem:[#allocation18_spill]] }
 0x25f   : > { %p26_p1 = scmp.ge.s32.totalorder %s29_s26, 8   ;;  %s1777_s23 = sld [smem:[#allocation20_spill]] }
 0x260   : > { %s1778_s8 = sld [smem:[#allocation19_spill]]  ;;  %s1779_s21 = smov %s1365_s22 }
 0x261   : > { %s1781_s24 = smov %s1377_s25  ;;  %28 = sbr.rel (!%p26_p1) target bundleno = 12 (0xc), region = 137 }
 0x264   : > { %s1780_s22 = smov %s1776_s10 }
 0x266   : > { %s1782_s25 = smov %s1778_s8 }
 0x268   :  { %844 = vsyncpa [#allocation3], 1 }
 0x269   :  { %846 = vsyncpa [#allocation3 + $0x1], 1 }
 0x26a   :  { %847 = vsyncpa [#allocation6], 1 }
 0x26b   :  { %849 = vsyncpa [#allocation6 + $0x1], 1 }
 0x26c   :  { %850 = vsyncpa [#allocation4], 1 }
 0x26d   :  { %852 = vsyncpa [#allocation4 + $0x1], 1 }
 0x26e   :  { %853 = vsyncpa [#allocation10], 1 }
 0x26f   :  { %855 = vsyncpa [#allocation10 + $0x1], 1 }

</bundles_post_ra>
